<compile_context>
chip_gen: v7x
topology: tpu7x:2x2x1
jax: 0.10.0
libtpu: 0.0.40
codegen_flags: <defaults>
</compile_context>

<pallas_src>
import functools

import jax
import jax.numpy as jnp
from jax import lax
from jax.experimental import pallas as pl
from jax.experimental.pallas import tpu as pltpu

FRAMES = 128  # fixed by the PyTorch module (frames = 128)


def _mlp_hr_kernel(x_ref, w3_ref, s_ref, out_ref, *, C, L, TB, CH):
    # x_ref:   (TB, C*L) f32 VMEM block; channel c = lanes [c*L, (c+1)*L)
    # w3_ref:  (C*C, L)  f32 VMEM, row c*C + o holds w3[o, c, :]  (resident)
    # s_ref:   (2*C*C + 3*C + 1,) f32 SMEM packed small params
    # out_ref: (TB, 1) VMEM block
    W1_OFF = 0
    W2_OFF = C * C
    B1_OFF = 2 * C * C
    B3_OFF = 2 * C * C + C
    W4_OFF = 2 * C * C + 2 * C
    B4_OFF = 2 * C * C + 3 * C

    # Hoist all scalar (SMEM) loads out of the chunk loop.
    w1 = [[s_ref[W1_OFF + o * C + c] for c in range(C)] for o in range(C)]
    w2 = [[s_ref[W2_OFF + o * C + c] for c in range(C)] for o in range(C)]
    b1 = [s_ref[B1_OFF + o] for o in range(C)]
    b3 = [s_ref[B3_OFF + o] for o in range(C)]
    w4 = [s_ref[W4_OFF + o] for o in range(C)]
    b4 = s_ref[B4_OFF]

    # fc1 weight rows, loaded and broadcast to the chunk shape ONCE (JAX does
    # not CSE broadcast_in_dim; keep them out of the loop).  C*C vregs at CH=8.
    w3_rows = [jnp.broadcast_to(w3_ref[r:r + 1, :], (CH, L))
               for r in range(C * C)]

    def chunk(row0):
        rows = pl.ds(row0, CH)
        # Load each input-channel slab exactly once (hoisted out of o-loops).
        xs = [x_ref[rows, pl.ds(c * L, L)] for c in range(C)]

        # --- Conv1d #1 (k=1) with BatchNorm folded in, + ReLU ----------------
        h = []
        for o in range(C):
            acc = w1[o][0] * xs[0]
            for c in range(1, C):
                acc = acc + w1[o][c] * xs[c]
            h.append(jnp.maximum(acc + b1[o], 0.0))

        # --- Conv1d #2 (k=1); its bias is folded into the fc1 bias -----------
        h2 = []
        for o in range(C):
            acc = w2[o][0] * h[0]
            for c in range(1, C):
                acc = acc + w2[o][c] * h[c]
            h2.append(acc)

        # --- fc1 (Linear frames*C -> C) + ReLU, fc2 (Linear C -> 1) ----------
        # Accumulate over channels first (VPU FMAs), reduce over L last: only
        # C cross-lane reduces per chunk.  fc2 folds into the same o-loop.
        out = None
        for o in range(C):
            acc = h2[0] * w3_rows[o]
            for c in range(1, C):
                acc = acc + h2[c] * w3_rows[c * C + o]
            col = jnp.sum(acc, axis=1, keepdims=True) + b3[o]     # (CH, 1)
            col = jnp.maximum(col, 0.0)
            out = col * w4[o] if out is None else out + col * w4[o]
        out_ref[rows, :] = (out + b4).astype(out_ref.dtype)

    num_chunks = TB // CH
    if num_chunks == 1:
        chunk(0)
    else:
        def body(j, carry):
            chunk(pl.multiple_of(j * CH, CH))
            return carry
        lax.fori_loop(0, num_chunks, body, 0)


def _fold_and_pack(params):
    """Host-side folding + packing of all the tiny parameters."""
    w1 = params["w1"]                      # (C, C)
    b1 = params["b1"][:, 0]                # (C,)
    scale = params["scale"][:, 0]          # (C,)  BN inference affine
    shift = params["shift"][:, 0]          # (C,)
    w2 = params["w2"]                      # (C, C)
    b2 = params["b2"][:, 0]                # (C,)
    w3 = params["w3"]                      # (C, C, L) = (out, in, frames)
    b3 = params["b3"].reshape(-1)          # (C,)
    w4 = params["w4"].reshape(-1)          # (C,)
    b4 = params["b4"].reshape(-1)          # (1,)

    C = w1.shape[0]
    L = w3.shape[-1]

    # Fold BatchNorm1d (inference affine) into conv1.
    w1p = scale[:, None] * w1
    b1p = scale * b1 + shift
    # Fold conv2 bias into the fc1 bias (constant over frames).
    b3p = b3 + jnp.einsum("ocl,c->o", w3, b2)

    # fc1 weight as a lane-dense slab: row c*C + o holds w3[o, c, :].
    w3_slab = jnp.transpose(w3, (1, 0, 2)).reshape(C * C, L).astype(jnp.float32)

    scal = jnp.concatenate(
        [w1p.reshape(-1), w2.reshape(-1), b1p, b3p, w4, b4]).astype(jnp.float32)
    return w3_slab, scal


def mlp_hr_forward(x, params, *, block_b=512):
    B, C, L = x.shape
    w3_slab, scal = _fold_and_pack(params)

    # Free reshape (same memory layout as torch's .view(B, -1)): channel c is
    # the lane range [c*L, (c+1)*L).  No transpose, no extra HBM pass.
    x2d = x.reshape(B, C * L).astype(jnp.float32)

    TB = B if B <= block_b else block_b         # batch rows per grid step
    CH = 8 if TB % 8 == 0 else TB               # sublane chunk inside a step
    grid = (pl.cdiv(B, TB),)

    flops = B * (3 * 2 * C * C * L + 2 * C)
    bytes_accessed = 4 * (B * C * L + C * C * L + scal.size + B)
    cost = pl.CostEstimate(flops=flops, transcendentals=0,
                           bytes_accessed=bytes_accessed)

    kernel = functools.partial(_mlp_hr_kernel, C=C, L=L, TB=TB, CH=CH)
    return pl.pallas_call(
        kernel,
        out_shape=jax.ShapeDtypeStruct((B, 1), x.dtype),
        grid=grid,
        in_specs=[
            pl.BlockSpec((TB, C * L), lambda i: (i, 0)),           # x streams
            pl.BlockSpec((C * C, L), lambda i: (0, 0)),            # w3 resident
            pl.BlockSpec(memory_space=pltpu.MemorySpace.SMEM),     # scalars
        ],
        out_specs=pl.BlockSpec((TB, 1), lambda i: (i, 0)),
        compiler_params=pltpu.CompilerParams(
            dimension_semantics=("parallel",)),
        cost_estimate=cost,
    )(x2d, w3_slab, scal)


def init_params(key, in_c, frames=FRAMES):
    ks = jax.random.split(key, 12)
    f32 = jnp.float32
    w1 = 0.1 * jax.random.normal(ks[0], (in_c, in_c), f32)
    b1 = 0.1 * jax.random.normal(ks[1], (in_c, 1), f32)
    gamma = 1.0 + 0.1 * jax.random.normal(ks[2], (in_c, 1), f32)
    beta = 0.1 * jax.random.normal(ks[3], (in_c, 1), f32)
    running_mean = 0.1 * jax.random.normal(ks[4], (in_c, 1), f32)
    running_var = 1.0 + 0.1 * jnp.abs(jax.random.normal(ks[5], (in_c, 1), f32))
    eps = 1e-5
    scale = gamma / jnp.sqrt(running_var + eps)
    shift = beta - running_mean * scale
    w2 = 0.1 * jax.random.normal(ks[6], (in_c, in_c), f32)
    b2 = 0.1 * jax.random.normal(ks[7], (in_c, 1), f32)
    # fc1 weight: (in_c, frames*in_c); torch's view(B,-1) on (C,L) is
    # channel-major, so feature index = c*frames + l  ->  reshape (in_c, C, L).
    w3_flat = 0.05 * jax.random.normal(ks[8], (in_c, frames * in_c), f32)
    w3 = w3_flat.reshape(in_c, in_c, frames)
    b3 = 0.1 * jax.random.normal(ks[9], (1, in_c), f32)
    w4 = 0.1 * jax.random.normal(ks[10], (1, in_c), f32)
    b4 = 0.1 * jax.random.normal(ks[11], (1, 1), f32)
    return dict(w1=w1, b1=b1, scale=scale, shift=shift, w2=w2, b2=b2,
                w3=w3, b3=b3, w4=w4, b4=b4)


def reference(x, p):
    """Plain-JAX reference mirroring the PyTorch forward (unfolded params)."""
    h = jnp.einsum("oc,bcl->bol", p["w1"], x) + p["b1"][None]
    h = h * p["scale"][None] + p["shift"][None]
    h = jnp.maximum(h, 0.0)
    h = jnp.einsum("oc,bcl->bol", p["w2"], h) + p["b2"][None]
    flat = h.reshape(x.shape[0], -1)                  # channel-major, like .view
    y = flat @ p["w3"].reshape(p["w3"].shape[0], -1).T + p["b3"]
    y = jnp.maximum(y, 0.0)
    y = y @ p["w4"].T + p["b4"]
    return y


if __name__ == "__main__":
    key = jax.random.PRNGKey(0)
    k_x, k_p = jax.random.split(key)

    B, in_c = 2, 4
    x = jax.random.normal(k_x, (B, in_c, FRAMES), jnp.float32)  # NCL, L = frames
    params = init_params(k_p, in_c)

    out = mlp_hr_forward(x, params)
    out = jax.block_until_ready(out)

    ref = reference(x, params)
    assert out.shape == (B, 1), out.shape
    assert jnp.allclose(out, ref, atol=1e-4, rtol=1e-4), (out, ref)
    print("KERNEL_OK")
</pallas_src>

<mosaic_0001>
module attributes {stable_mosaic.version = 11 : i64} {
  func.func @_mlp_hr_kernel(%arg0: i32, %arg1: memref<2x512xf32, #tpu.memory_space<vmem>>, %arg2: memref<16x128xf32, #tpu.memory_space<vmem>>, %arg3: memref<45xf32, #tpu.memory_space<smem>>, %arg4: memref<2x1xf32, #tpu.memory_space<vmem>>) attributes {dimension_semantics = [#tpu.dimension_semantics<parallel>], iteration_bounds = array<i64: 1>, scalar_prefetch = 0 : i64, scratch_operands = 0 : i64, tpu.core_type = #tpu.core_type<tc>, window_params = [{transform_indices = @transform_0, window_bounds = array<i64: 2, 512>}, {pipeline_mode = #tpu.pipeline_mode<synchronous>, transform_indices = @transform_1, window_bounds = array<i64: 16, 128>}, {transform_indices = @transform_2, window_bounds = array<i64: 45>}, {transform_indices = @transform_3, window_bounds = array<i64: 2, 1>}]} {
    %c0 = arith.constant 0 : index
    %0 = memref.load %arg3[%c0] : memref<45xf32, #tpu.memory_space<smem>>
    %c1 = arith.constant 1 : index
    %1 = memref.load %arg3[%c1] : memref<45xf32, #tpu.memory_space<smem>>
    %c2 = arith.constant 2 : index
    %2 = memref.load %arg3[%c2] : memref<45xf32, #tpu.memory_space<smem>>
    %c3 = arith.constant 3 : index
    %3 = memref.load %arg3[%c3] : memref<45xf32, #tpu.memory_space<smem>>
    %c4 = arith.constant 4 : index
    %4 = memref.load %arg3[%c4] : memref<45xf32, #tpu.memory_space<smem>>
    %c5 = arith.constant 5 : index
    %5 = memref.load %arg3[%c5] : memref<45xf32, #tpu.memory_space<smem>>
    %c6 = arith.constant 6 : index
    %6 = memref.load %arg3[%c6] : memref<45xf32, #tpu.memory_space<smem>>
    %c7 = arith.constant 7 : index
    %7 = memref.load %arg3[%c7] : memref<45xf32, #tpu.memory_space<smem>>
    %c8 = arith.constant 8 : index
    %8 = memref.load %arg3[%c8] : memref<45xf32, #tpu.memory_space<smem>>
    %c9 = arith.constant 9 : index
    %9 = memref.load %arg3[%c9] : memref<45xf32, #tpu.memory_space<smem>>
    %c10 = arith.constant 10 : index
    %10 = memref.load %arg3[%c10] : memref<45xf32, #tpu.memory_space<smem>>
    %c11 = arith.constant 11 : index
    %11 = memref.load %arg3[%c11] : memref<45xf32, #tpu.memory_space<smem>>
    %c12 = arith.constant 12 : index
    %12 = memref.load %arg3[%c12] : memref<45xf32, #tpu.memory_space<smem>>
    %c13 = arith.constant 13 : index
    %13 = memref.load %arg3[%c13] : memref<45xf32, #tpu.memory_space<smem>>
    %c14 = arith.constant 14 : index
    %14 = memref.load %arg3[%c14] : memref<45xf32, #tpu.memory_space<smem>>
    %c15 = arith.constant 15 : index
    %15 = memref.load %arg3[%c15] : memref<45xf32, #tpu.memory_space<smem>>
    %c16 = arith.constant 16 : index
    %16 = memref.load %arg3[%c16] : memref<45xf32, #tpu.memory_space<smem>>
    %c17 = arith.constant 17 : index
    %17 = memref.load %arg3[%c17] : memref<45xf32, #tpu.memory_space<smem>>
    %c18 = arith.constant 18 : index
    %18 = memref.load %arg3[%c18] : memref<45xf32, #tpu.memory_space<smem>>
    %c19 = arith.constant 19 : index
    %19 = memref.load %arg3[%c19] : memref<45xf32, #tpu.memory_space<smem>>
    %c20 = arith.constant 20 : index
    %20 = memref.load %arg3[%c20] : memref<45xf32, #tpu.memory_space<smem>>
    %c21 = arith.constant 21 : index
    %21 = memref.load %arg3[%c21] : memref<45xf32, #tpu.memory_space<smem>>
    %c22 = arith.constant 22 : index
    %22 = memref.load %arg3[%c22] : memref<45xf32, #tpu.memory_space<smem>>
    %c23 = arith.constant 23 : index
    %23 = memref.load %arg3[%c23] : memref<45xf32, #tpu.memory_space<smem>>
    %c24 = arith.constant 24 : index
    %24 = memref.load %arg3[%c24] : memref<45xf32, #tpu.memory_space<smem>>
    %c25 = arith.constant 25 : index
    %25 = memref.load %arg3[%c25] : memref<45xf32, #tpu.memory_space<smem>>
    %c26 = arith.constant 26 : index
    %26 = memref.load %arg3[%c26] : memref<45xf32, #tpu.memory_space<smem>>
    %c27 = arith.constant 27 : index
    %27 = memref.load %arg3[%c27] : memref<45xf32, #tpu.memory_space<smem>>
    %c28 = arith.constant 28 : index
    %28 = memref.load %arg3[%c28] : memref<45xf32, #tpu.memory_space<smem>>
    %c29 = arith.constant 29 : index
    %29 = memref.load %arg3[%c29] : memref<45xf32, #tpu.memory_space<smem>>
    %c30 = arith.constant 30 : index
    %30 = memref.load %arg3[%c30] : memref<45xf32, #tpu.memory_space<smem>>
    %c31 = arith.constant 31 : index
    %31 = memref.load %arg3[%c31] : memref<45xf32, #tpu.memory_space<smem>>
    %c32 = arith.constant 32 : index
    %32 = memref.load %arg3[%c32] : memref<45xf32, #tpu.memory_space<smem>>
    %c33 = arith.constant 33 : index
    %33 = memref.load %arg3[%c33] : memref<45xf32, #tpu.memory_space<smem>>
    %c34 = arith.constant 34 : index
    %34 = memref.load %arg3[%c34] : memref<45xf32, #tpu.memory_space<smem>>
    %c35 = arith.constant 35 : index
    %35 = memref.load %arg3[%c35] : memref<45xf32, #tpu.memory_space<smem>>
    %c36 = arith.constant 36 : index
    %36 = memref.load %arg3[%c36] : memref<45xf32, #tpu.memory_space<smem>>
    %c37 = arith.constant 37 : index
    %37 = memref.load %arg3[%c37] : memref<45xf32, #tpu.memory_space<smem>>
    %c38 = arith.constant 38 : index
    %38 = memref.load %arg3[%c38] : memref<45xf32, #tpu.memory_space<smem>>
    %c39 = arith.constant 39 : index
    %39 = memref.load %arg3[%c39] : memref<45xf32, #tpu.memory_space<smem>>
    %c40 = arith.constant 40 : index
    %40 = memref.load %arg3[%c40] : memref<45xf32, #tpu.memory_space<smem>>
    %c41 = arith.constant 41 : index
    %41 = memref.load %arg3[%c41] : memref<45xf32, #tpu.memory_space<smem>>
    %c42 = arith.constant 42 : index
    %42 = memref.load %arg3[%c42] : memref<45xf32, #tpu.memory_space<smem>>
    %c43 = arith.constant 43 : index
    %43 = memref.load %arg3[%c43] : memref<45xf32, #tpu.memory_space<smem>>
    %c44 = arith.constant 44 : index
    %44 = memref.load %arg3[%c44] : memref<45xf32, #tpu.memory_space<smem>>
    %c0_0 = arith.constant 0 : index
    %c0_1 = arith.constant 0 : index
    %45 = vector.load %arg2[%c0_0, %c0_1] : memref<16x128xf32, #tpu.memory_space<vmem>>, vector<1x128xf32>
    %46 = vector.shape_cast %45 : vector<1x128xf32> to vector<1x128xf32>
    %47 = vector.broadcast %46 : vector<1x128xf32> to vector<2x128xf32>
    %c1_2 = arith.constant 1 : index
    %c0_3 = arith.constant 0 : index
    %48 = vector.load %arg2[%c1_2, %c0_3] : memref<16x128xf32, #tpu.memory_space<vmem>>, vector<1x128xf32>
    %49 = vector.shape_cast %48 : vector<1x128xf32> to vector<1x128xf32>
    %50 = vector.broadcast %49 : vector<1x128xf32> to vector<2x128xf32>
    %c2_4 = arith.constant 2 : index
    %c0_5 = arith.constant 0 : index
    %51 = vector.load %arg2[%c2_4, %c0_5] : memref<16x128xf32, #tpu.memory_space<vmem>>, vector<1x128xf32>
    %52 = vector.shape_cast %51 : vector<1x128xf32> to vector<1x128xf32>
    %53 = vector.broadcast %52 : vector<1x128xf32> to vector<2x128xf32>
    %c3_6 = arith.constant 3 : index
    %c0_7 = arith.constant 0 : index
    %54 = vector.load %arg2[%c3_6, %c0_7] : memref<16x128xf32, #tpu.memory_space<vmem>>, vector<1x128xf32>
    %55 = vector.shape_cast %54 : vector<1x128xf32> to vector<1x128xf32>
    %56 = vector.broadcast %55 : vector<1x128xf32> to vector<2x128xf32>
    %c4_8 = arith.constant 4 : index
    %c0_9 = arith.constant 0 : index
    %57 = vector.load %arg2[%c4_8, %c0_9] : memref<16x128xf32, #tpu.memory_space<vmem>>, vector<1x128xf32>
    %58 = vector.shape_cast %57 : vector<1x128xf32> to vector<1x128xf32>
    %59 = vector.broadcast %58 : vector<1x128xf32> to vector<2x128xf32>
    %c5_10 = arith.constant 5 : index
    %c0_11 = arith.constant 0 : index
    %60 = vector.load %arg2[%c5_10, %c0_11] : memref<16x128xf32, #tpu.memory_space<vmem>>, vector<1x128xf32>
    %61 = vector.shape_cast %60 : vector<1x128xf32> to vector<1x128xf32>
    %62 = vector.broadcast %61 : vector<1x128xf32> to vector<2x128xf32>
    %c6_12 = arith.constant 6 : index
    %c0_13 = arith.constant 0 : index
    %63 = vector.load %arg2[%c6_12, %c0_13] : memref<16x128xf32, #tpu.memory_space<vmem>>, vector<1x128xf32>
    %64 = vector.shape_cast %63 : vector<1x128xf32> to vector<1x128xf32>
    %65 = vector.broadcast %64 : vector<1x128xf32> to vector<2x128xf32>
    %c7_14 = arith.constant 7 : index
    %c0_15 = arith.constant 0 : index
    %66 = vector.load %arg2[%c7_14, %c0_15] : memref<16x128xf32, #tpu.memory_space<vmem>>, vector<1x128xf32>
    %67 = vector.shape_cast %66 : vector<1x128xf32> to vector<1x128xf32>
    %68 = vector.broadcast %67 : vector<1x128xf32> to vector<2x128xf32>
    %c8_16 = arith.constant 8 : index
    %c0_17 = arith.constant 0 : index
    %69 = vector.load %arg2[%c8_16, %c0_17] : memref<16x128xf32, #tpu.memory_space<vmem>>, vector<1x128xf32>
    %70 = vector.shape_cast %69 : vector<1x128xf32> to vector<1x128xf32>
    %71 = vector.broadcast %70 : vector<1x128xf32> to vector<2x128xf32>
    %c9_18 = arith.constant 9 : index
    %c0_19 = arith.constant 0 : index
    %72 = vector.load %arg2[%c9_18, %c0_19] : memref<16x128xf32, #tpu.memory_space<vmem>>, vector<1x128xf32>
    %73 = vector.shape_cast %72 : vector<1x128xf32> to vector<1x128xf32>
    %74 = vector.broadcast %73 : vector<1x128xf32> to vector<2x128xf32>
    %c10_20 = arith.constant 10 : index
    %c0_21 = arith.constant 0 : index
    %75 = vector.load %arg2[%c10_20, %c0_21] : memref<16x128xf32, #tpu.memory_space<vmem>>, vector<1x128xf32>
    %76 = vector.shape_cast %75 : vector<1x128xf32> to vector<1x128xf32>
    %77 = vector.broadcast %76 : vector<1x128xf32> to vector<2x128xf32>
    %c11_22 = arith.constant 11 : index
    %c0_23 = arith.constant 0 : index
    %78 = vector.load %arg2[%c11_22, %c0_23] : memref<16x128xf32, #tpu.memory_space<vmem>>, vector<1x128xf32>
    %79 = vector.shape_cast %78 : vector<1x128xf32> to vector<1x128xf32>
    %80 = vector.broadcast %79 : vector<1x128xf32> to vector<2x128xf32>
    %c12_24 = arith.constant 12 : index
    %c0_25 = arith.constant 0 : index
    %81 = vector.load %arg2[%c12_24, %c0_25] : memref<16x128xf32, #tpu.memory_space<vmem>>, vector<1x128xf32>
    %82 = vector.shape_cast %81 : vector<1x128xf32> to vector<1x128xf32>
    %83 = vector.broadcast %82 : vector<1x128xf32> to vector<2x128xf32>
    %c13_26 = arith.constant 13 : index
    %c0_27 = arith.constant 0 : index
    %84 = vector.load %arg2[%c13_26, %c0_27] : memref<16x128xf32, #tpu.memory_space<vmem>>, vector<1x128xf32>
    %85 = vector.shape_cast %84 : vector<1x128xf32> to vector<1x128xf32>
    %86 = vector.broadcast %85 : vector<1x128xf32> to vector<2x128xf32>
    %c14_28 = arith.constant 14 : index
    %c0_29 = arith.constant 0 : index
    %87 = vector.load %arg2[%c14_28, %c0_29] : memref<16x128xf32, #tpu.memory_space<vmem>>, vector<1x128xf32>
    %88 = vector.shape_cast %87 : vector<1x128xf32> to vector<1x128xf32>
    %89 = vector.broadcast %88 : vector<1x128xf32> to vector<2x128xf32>
    %c15_30 = arith.constant 15 : index
    %c0_31 = arith.constant 0 : index
    %90 = vector.load %arg2[%c15_30, %c0_31] : memref<16x128xf32, #tpu.memory_space<vmem>>, vector<1x128xf32>
    %91 = vector.shape_cast %90 : vector<1x128xf32> to vector<1x128xf32>
    %92 = vector.broadcast %91 : vector<1x128xf32> to vector<2x128xf32>
    %c0_32 = arith.constant 0 : index
    %c0_33 = arith.constant 0 : index
    %93 = vector.load %arg1[%c0_32, %c0_33] : memref<2x512xf32, #tpu.memory_space<vmem>>, vector<2x128xf32>
    %c0_34 = arith.constant 0 : index
    %c128 = arith.constant 128 : index
    %94 = vector.load %arg1[%c0_34, %c128] : memref<2x512xf32, #tpu.memory_space<vmem>>, vector<2x128xf32>
    %c0_35 = arith.constant 0 : index
    %c256 = arith.constant 256 : index
    %95 = vector.load %arg1[%c0_35, %c256] : memref<2x512xf32, #tpu.memory_space<vmem>>, vector<2x128xf32>
    %c0_36 = arith.constant 0 : index
    %c384 = arith.constant 384 : index
    %96 = vector.load %arg1[%c0_36, %c384] : memref<2x512xf32, #tpu.memory_space<vmem>>, vector<2x128xf32>
    %97 = vector.broadcast %0 : f32 to vector<2x128xf32>
    %98 = arith.mulf %97, %93 : vector<2x128xf32>
    %99 = vector.broadcast %1 : f32 to vector<2x128xf32>
    %100 = arith.mulf %99, %94 : vector<2x128xf32>
    %101 = arith.addf %98, %100 : vector<2x128xf32>
    %102 = vector.broadcast %2 : f32 to vector<2x128xf32>
    %103 = arith.mulf %102, %95 : vector<2x128xf32>
    %104 = arith.addf %101, %103 : vector<2x128xf32>
    %105 = vector.broadcast %3 : f32 to vector<2x128xf32>
    %106 = arith.mulf %105, %96 : vector<2x128xf32>
    %107 = arith.addf %104, %106 : vector<2x128xf32>
    %108 = vector.broadcast %32 : f32 to vector<2x128xf32>
    %109 = arith.addf %107, %108 : vector<2x128xf32>
    %cst = arith.constant 0.000000e+00 : f32
    %110 = vector.broadcast %cst : f32 to vector<2x128xf32>
    %111 = arith.maximumf %109, %110 : vector<2x128xf32>
    %112 = vector.broadcast %4 : f32 to vector<2x128xf32>
    %113 = arith.mulf %112, %93 : vector<2x128xf32>
    %114 = vector.broadcast %5 : f32 to vector<2x128xf32>
    %115 = arith.mulf %114, %94 : vector<2x128xf32>
    %116 = arith.addf %113, %115 : vector<2x128xf32>
    %117 = vector.broadcast %6 : f32 to vector<2x128xf32>
    %118 = arith.mulf %117, %95 : vector<2x128xf32>
    %119 = arith.addf %116, %118 : vector<2x128xf32>
    %120 = vector.broadcast %7 : f32 to vector<2x128xf32>
    %121 = arith.mulf %120, %96 : vector<2x128xf32>
    %122 = arith.addf %119, %121 : vector<2x128xf32>
    %123 = vector.broadcast %33 : f32 to vector<2x128xf32>
    %124 = arith.addf %122, %123 : vector<2x128xf32>
    %cst_37 = arith.constant 0.000000e+00 : f32
    %125 = vector.broadcast %cst_37 : f32 to vector<2x128xf32>
    %126 = arith.maximumf %124, %125 : vector<2x128xf32>
    %127 = vector.broadcast %8 : f32 to vector<2x128xf32>
    %128 = arith.mulf %127, %93 : vector<2x128xf32>
    %129 = vector.broadcast %9 : f32 to vector<2x128xf32>
    %130 = arith.mulf %129, %94 : vector<2x128xf32>
    %131 = arith.addf %128, %130 : vector<2x128xf32>
    %132 = vector.broadcast %10 : f32 to vector<2x128xf32>
    %133 = arith.mulf %132, %95 : vector<2x128xf32>
    %134 = arith.addf %131, %133 : vector<2x128xf32>
    %135 = vector.broadcast %11 : f32 to vector<2x128xf32>
    %136 = arith.mulf %135, %96 : vector<2x128xf32>
    %137 = arith.addf %134, %136 : vector<2x128xf32>
    %138 = vector.broadcast %34 : f32 to vector<2x128xf32>
    %139 = arith.addf %137, %138 : vector<2x128xf32>
    %cst_38 = arith.constant 0.000000e+00 : f32
    %140 = vector.broadcast %cst_38 : f32 to vector<2x128xf32>
    %141 = arith.maximumf %139, %140 : vector<2x128xf32>
    %142 = vector.broadcast %12 : f32 to vector<2x128xf32>
    %143 = arith.mulf %142, %93 : vector<2x128xf32>
    %144 = vector.broadcast %13 : f32 to vector<2x128xf32>
    %145 = arith.mulf %144, %94 : vector<2x128xf32>
    %146 = arith.addf %143, %145 : vector<2x128xf32>
    %147 = vector.broadcast %14 : f32 to vector<2x128xf32>
    %148 = arith.mulf %147, %95 : vector<2x128xf32>
    %149 = arith.addf %146, %148 : vector<2x128xf32>
    %150 = vector.broadcast %15 : f32 to vector<2x128xf32>
    %151 = arith.mulf %150, %96 : vector<2x128xf32>
    %152 = arith.addf %149, %151 : vector<2x128xf32>
    %153 = vector.broadcast %35 : f32 to vector<2x128xf32>
    %154 = arith.addf %152, %153 : vector<2x128xf32>
    %cst_39 = arith.constant 0.000000e+00 : f32
    %155 = vector.broadcast %cst_39 : f32 to vector<2x128xf32>
    %156 = arith.maximumf %154, %155 : vector<2x128xf32>
    %157 = vector.broadcast %16 : f32 to vector<2x128xf32>
    %158 = arith.mulf %157, %111 : vector<2x128xf32>
    %159 = vector.broadcast %17 : f32 to vector<2x128xf32>
    %160 = arith.mulf %159, %126 : vector<2x128xf32>
    %161 = arith.addf %158, %160 : vector<2x128xf32>
    %162 = vector.broadcast %18 : f32 to vector<2x128xf32>
    %163 = arith.mulf %162, %141 : vector<2x128xf32>
    %164 = arith.addf %161, %163 : vector<2x128xf32>
    %165 = vector.broadcast %19 : f32 to vector<2x128xf32>
    %166 = arith.mulf %165, %156 : vector<2x128xf32>
    %167 = arith.addf %164, %166 : vector<2x128xf32>
    %168 = vector.broadcast %20 : f32 to vector<2x128xf32>
    %169 = arith.mulf %168, %111 : vector<2x128xf32>
    %170 = vector.broadcast %21 : f32 to vector<2x128xf32>
    %171 = arith.mulf %170, %126 : vector<2x128xf32>
    %172 = arith.addf %169, %171 : vector<2x128xf32>
    %173 = vector.broadcast %22 : f32 to vector<2x128xf32>
    %174 = arith.mulf %173, %141 : vector<2x128xf32>
    %175 = arith.addf %172, %174 : vector<2x128xf32>
    %176 = vector.broadcast %23 : f32 to vector<2x128xf32>
    %177 = arith.mulf %176, %156 : vector<2x128xf32>
    %178 = arith.addf %175, %177 : vector<2x128xf32>
    %179 = vector.broadcast %24 : f32 to vector<2x128xf32>
    %180 = arith.mulf %179, %111 : vector<2x128xf32>
    %181 = vector.broadcast %25 : f32 to vector<2x128xf32>
    %182 = arith.mulf %181, %126 : vector<2x128xf32>
    %183 = arith.addf %180, %182 : vector<2x128xf32>
    %184 = vector.broadcast %26 : f32 to vector<2x128xf32>
    %185 = arith.mulf %184, %141 : vector<2x128xf32>
    %186 = arith.addf %183, %185 : vector<2x128xf32>
    %187 = vector.broadcast %27 : f32 to vector<2x128xf32>
    %188 = arith.mulf %187, %156 : vector<2x128xf32>
    %189 = arith.addf %186, %188 : vector<2x128xf32>
    %190 = vector.broadcast %28 : f32 to vector<2x128xf32>
    %191 = arith.mulf %190, %111 : vector<2x128xf32>
    %192 = vector.broadcast %29 : f32 to vector<2x128xf32>
    %193 = arith.mulf %192, %126 : vector<2x128xf32>
    %194 = arith.addf %191, %193 : vector<2x128xf32>
    %195 = vector.broadcast %30 : f32 to vector<2x128xf32>
    %196 = arith.mulf %195, %141 : vector<2x128xf32>
    %197 = arith.addf %194, %196 : vector<2x128xf32>
    %198 = vector.broadcast %31 : f32 to vector<2x128xf32>
    %199 = arith.mulf %198, %156 : vector<2x128xf32>
    %200 = arith.addf %197, %199 : vector<2x128xf32>
    %201 = arith.mulf %167, %47 : vector<2x128xf32>
    %202 = arith.mulf %178, %59 : vector<2x128xf32>
    %203 = arith.addf %201, %202 : vector<2x128xf32>
    %204 = arith.mulf %189, %71 : vector<2x128xf32>
    %205 = arith.addf %203, %204 : vector<2x128xf32>
    %206 = arith.mulf %200, %83 : vector<2x128xf32>
    %207 = arith.addf %205, %206 : vector<2x128xf32>
    %cst_40 = arith.constant dense<0.000000e+00> : vector<2xf32>
    %208 = vector.multi_reduction <add>, %207, %cst_40 [1] : vector<2x128xf32> to vector<2xf32>
    %209 = vector.shape_cast %208 : vector<2xf32> to vector<2x1xf32>
    %210 = vector.broadcast %36 : f32 to vector<2x1xf32>
    %211 = arith.addf %209, %210 : vector<2x1xf32>
    %cst_41 = arith.constant 0.000000e+00 : f32
    %212 = vector.broadcast %cst_41 : f32 to vector<2x1xf32>
    %213 = arith.maximumf %211, %212 : vector<2x1xf32>
    %214 = vector.broadcast %40 : f32 to vector<2x1xf32>
    %215 = arith.mulf %213, %214 : vector<2x1xf32>
    %216 = arith.mulf %167, %50 : vector<2x128xf32>
    %217 = arith.mulf %178, %62 : vector<2x128xf32>
    %218 = arith.addf %216, %217 : vector<2x128xf32>
    %219 = arith.mulf %189, %74 : vector<2x128xf32>
    %220 = arith.addf %218, %219 : vector<2x128xf32>
    %221 = arith.mulf %200, %86 : vector<2x128xf32>
    %222 = arith.addf %220, %221 : vector<2x128xf32>
    %cst_42 = arith.constant dense<0.000000e+00> : vector<2xf32>
    %223 = vector.multi_reduction <add>, %222, %cst_42 [1] : vector<2x128xf32> to vector<2xf32>
    %224 = vector.shape_cast %223 : vector<2xf32> to vector<2x1xf32>
    %225 = vector.broadcast %37 : f32 to vector<2x1xf32>
    %226 = arith.addf %224, %225 : vector<2x1xf32>
    %cst_43 = arith.constant 0.000000e+00 : f32
    %227 = vector.broadcast %cst_43 : f32 to vector<2x1xf32>
    %228 = arith.maximumf %226, %227 : vector<2x1xf32>
    %229 = vector.broadcast %41 : f32 to vector<2x1xf32>
    %230 = arith.mulf %228, %229 : vector<2x1xf32>
    %231 = arith.addf %215, %230 : vector<2x1xf32>
    %232 = arith.mulf %167, %53 : vector<2x128xf32>
    %233 = arith.mulf %178, %65 : vector<2x128xf32>
    %234 = arith.addf %232, %233 : vector<2x128xf32>
    %235 = arith.mulf %189, %77 : vector<2x128xf32>
    %236 = arith.addf %234, %235 : vector<2x128xf32>
    %237 = arith.mulf %200, %89 : vector<2x128xf32>
    %238 = arith.addf %236, %237 : vector<2x128xf32>
    %cst_44 = arith.constant dense<0.000000e+00> : vector<2xf32>
    %239 = vector.multi_reduction <add>, %238, %cst_44 [1] : vector<2x128xf32> to vector<2xf32>
    %240 = vector.shape_cast %239 : vector<2xf32> to vector<2x1xf32>
    %241 = vector.broadcast %38 : f32 to vector<2x1xf32>
    %242 = arith.addf %240, %241 : vector<2x1xf32>
    %cst_45 = arith.constant 0.000000e+00 : f32
    %243 = vector.broadcast %cst_45 : f32 to vector<2x1xf32>
    %244 = arith.maximumf %242, %243 : vector<2x1xf32>
    %245 = vector.broadcast %42 : f32 to vector<2x1xf32>
    %246 = arith.mulf %244, %245 : vector<2x1xf32>
    %247 = arith.addf %231, %246 : vector<2x1xf32>
    %248 = arith.mulf %167, %56 : vector<2x128xf32>
    %249 = arith.mulf %178, %68 : vector<2x128xf32>
    %250 = arith.addf %248, %249 : vector<2x128xf32>
    %251 = arith.mulf %189, %80 : vector<2x128xf32>
    %252 = arith.addf %250, %251 : vector<2x128xf32>
    %253 = arith.mulf %200, %92 : vector<2x128xf32>
    %254 = arith.addf %252, %253 : vector<2x128xf32>
    %cst_46 = arith.constant dense<0.000000e+00> : vector<2xf32>
    %255 = vector.multi_reduction <add>, %254, %cst_46 [1] : vector<2x128xf32> to vector<2xf32>
    %256 = vector.shape_cast %255 : vector<2xf32> to vector<2x1xf32>
    %257 = vector.broadcast %39 : f32 to vector<2x1xf32>
    %258 = arith.addf %256, %257 : vector<2x1xf32>
    %cst_47 = arith.constant 0.000000e+00 : f32
    %259 = vector.broadcast %cst_47 : f32 to vector<2x1xf32>
    %260 = arith.maximumf %258, %259 : vector<2x1xf32>
    %261 = vector.broadcast %43 : f32 to vector<2x1xf32>
    %262 = arith.mulf %260, %261 : vector<2x1xf32>
    %263 = arith.addf %247, %262 : vector<2x1xf32>
    %264 = vector.broadcast %44 : f32 to vector<2x1xf32>
    %265 = arith.addf %263, %264 : vector<2x1xf32>
    %c0_48 = arith.constant 0 : index
    %c0_49 = arith.constant 0 : index
    %266 = vector.load %arg4[%c0_48, %c0_49] : memref<2x1xf32, #tpu.memory_space<vmem>>, vector<2x1xf32>
    tpu.vector_store %arg4[%c0_48, %c0_49], %265 {strides = array<i32>} : memref<2x1xf32, #tpu.memory_space<vmem>>, vector<2x1xf32>,
    return
  }
  func.func @transform_0(%arg0: i32) -> (i32, i32) {
    %c0_i32 = arith.constant 0 : i32
    %c0_i32_0 = arith.constant 0 : i32
    return %arg0, %c0_i32 : i32, i32
  }
  func.func @transform_1(%arg0: i32) -> (i32, i32) {
    %c0_i32 = arith.constant 0 : i32
    %c0_i32_0 = arith.constant 0 : i32
    %c0_i32_1 = arith.constant 0 : i32
    return %c0_i32, %c0_i32_0 : i32, i32
  }
  func.func @transform_2(%arg0: i32) -> i32 {
    %c0_i32 = arith.constant 0 : i32
    %c0_i32_0 = arith.constant 0 : i32
    return %c0_i32 : i32
  }
  func.func @transform_3(%arg0: i32) -> (i32, i32) {
    %c0_i32 = arith.constant 0 : i32
    %c0_i32_0 = arith.constant 0 : i32
    return %arg0, %c0_i32 : i32, i32
  }
}

</mosaic_0001>

<bundles_post_ra>
// kernel: tpu_custom_call.1
= control target key start
LH: loop header
LB: loop body
LE: loop exit
PB: predicated region body
PF: predicated region fallthrough
CT: control target
= control target key end

     0   :  { %8 = vsyncpa [#allocation3], 0  ;;  %s631_s0 = inlined_call_operand.hbm [shape: f32[2,512], index: 0, kind: input, shape index: {}]   ;;  %s632_s1 = inlined_call_operand.hbm [shape: f32[16,128], index: 1, kind: input, shape index: {}]   ;;  %s633_s2 = inlined_call_operand.vmem [shape: f32[45], index: 2, kind: input, shape index: {}]   ;;  %s634_s3 = inlined_call_operand.vmem [shape: f32[2,1], index: 3, kind: output, shape index: {}]  }
   0x1   :  { %9 = vsyncpa [#allocation6], 0 }
   0x2   :  { %10 = vsyncpa [#allocation4], 0  ;;  %s484_s12 = smov [#allocation2]   ;;  %s485_s14 = smov [#allocation5]  }
   0x3   :  { %s17_s13 = sshll.u32 %s484_s12, 4  ;;  %s26_s15 = sshll.u32 %s485_s14, 4  ;;  %s18_s13 = int_to_ptr.vmem [resolvable:$true] %s17_s13  ;;  %s509_s15 = int_to_ptr.vmem [resolvable:$true] %s26_s15 }
   0x4   :  { %s422_s18 = scalar_lea.hbm %s631_s0, 128 }
   0x5   :  { %p423_p0 = scmp.ne.s32.totalorder %s631_s0, %s422_s18  ;;  %p426_p1 = scmp.lt.u32.totalorder %s422_s18, %s631_s0 }
   0x7   :  { %p428_p2 = pnand %p426_p1, %p423_p0 }
   0x9   :  { %431 = shalt.err (!%p428_p2)
}
   0xa   :  { %s432_s23 = scalar_lea.vmem %s18_s13, 128  ;;  %p437_p4 = scmp.lt.s32.totalorder %s18_s13, %s18_s13 }
   0xb   :  { %p433_p3 = scmp.ne.s32.totalorder %s18_s13, %s432_s23  ;;  %p438_p5 = scmp.lt.s32.totalorder %s432_s23, %s432_s23 }
   0xd   :  { %p439_p6 = por %p438_p5, %p437_p4 }
   0xf   :  { %p440_p7 = pnand %p439_p6, %p433_p3 }
  0x11   :  { %443 = shalt.err (!%p440_p7)
}
  0x12   :  { %20 = dma.hbm_to_vmem [thread:$0]  %s631_s0, 128, %s18_s13, [#allocation3]  }
  0x13   :  { %s444_s28 = scalar_lea.hbm %s632_s1, 256 }
  0x14   :  { %p445_p8 = scmp.ne.s32.totalorder %s632_s1, %s444_s28  ;;  %p448_p9 = scmp.lt.u32.totalorder %s444_s28, %s632_s1 }
  0x16   :  { %p450_p10 = pnand %p448_p9, %p445_p8 }
  0x18   :  { %453 = shalt.err (!%p450_p10)
}
  0x19   :  { %s454_s6 = scalar_lea.vmem %s509_s15, 256  ;;  %p459_p12 = scmp.lt.s32.totalorder %s509_s15, %s509_s15 }
  0x1a   :  { %p455_p11 = scmp.ne.s32.totalorder %s509_s15, %s454_s6  ;;  %p460_p13 = scmp.lt.s32.totalorder %s454_s6, %s454_s6 }
  0x1c   :  { %p461_p0 = por %p460_p13, %p459_p12 }
  0x1e   :  { %p462_p1 = pnand %p461_p0, %p455_p11 }
  0x20   :  { %465 = shalt.err (!%p462_p1)
}
  0x21   :  { %s486_s0 = smov 128   ;;  %s487_s7 = smov 8  }
  0x22   :  { %32 = dma.hbm_to_vmem [thread:$0]  %s632_s1, 256, %s509_s15, [#allocation6], %s486_s0, %s486_s0, %s487_s7  }
  0x23   :  { %s39_s12 = sshll.u32 %s633_s2, 4  ;;  %s40_s12 = int_to_ptr.vmem [resolvable:$true] %s39_s12 }
  0x24   :  { %s466_s13 = scalar_lea.vmem %s40_s12, 16  ;;  %p471_p3 = scmp.lt.s32.totalorder %s40_s12, %s40_s12 }
  0x25   :  { %p467_p2 = scmp.ne.s32.totalorder %s40_s12, %s466_s13  ;;  %p472_p4 = scmp.lt.s32.totalorder %s466_s13, %s466_s13 }
  0x27   :  { %p473_p5 = por %p472_p4, %p471_p3 }
  0x29   :  { %p474_p6 = pnand %p473_p5, %p467_p2 }
  0x2b   :  { %477 = shalt.err (!%p474_p6)
}
  0x2c   :  { %s488_s14 = smov [#allocation7]  }
  0x2d   :  { %42 = dma.vmem_to_smem %s40_s12, 16, %s488_s14, [#allocation4]  }
  0x2e   :  { %478 = dma.done.wait [#allocation3], 128  }
  0x2f   :  { %479 = vsyncadd [#allocation3], 4294967168 }
  0x30   :  { %480 = dma.done.wait [#allocation6], 256  }
  0x31   :  { %481 = vsyncadd [#allocation6], 4294967040 }
  0x32   :  { %482 = dma.done.wait [#allocation4], 16  }
  0x33   :  { %483 = vsyncadd [#allocation4], 4294967280 }
  0x34   :  { %52 = sfence }
  0x35   :  { %s53_s1 = sld [smem:[#allocation7]]  ;;  %s357_s15 = sld [smem:[#allocation7 + $0x1]]  ;;  %v178_v0 = vld [vmem:[#allocation2] sm:$0x3]  ;;  %v179_v1 = vld [vmem:[#allocation2 + $0x2] sm:$0x3] }
  0x36   :  { %s358_s2 = sld [smem:[#allocation7 + $0x2]]  ;;  %s543_s16 = sld [smem:[#allocation7 + $0x3]]  ;;  %v180_v2 = vld [vmem:[#allocation2 + $0x4] sm:$0x3]  ;;  %v181_v12 = vld [vmem:[#allocation2 + $0x6] sm:$0x3] }
  0x37   :  { %s360_s17 = sld [smem:[#allocation7 + $0x4]]  ;;  %s361_s18 = sld [smem:[#allocation7 + $0x5]]  ;;  %vm289_vm0 = vcmask 1041408   ;;  %vm348_vm1 = vcmask 1024  }
  0x38   :  { %s545_s19 = sld [smem:[#allocation7 + $0x6]]  ;;  %s547_s20 = sld [smem:[#allocation7 + $0x7]] }
  0x39   :  { %s549_s21 = sld [smem:[#allocation7 + $0x8]]  ;;  %s551_s22 = sld [smem:[#allocation7 + $0x9]] }
  0x3a   :  { %s553_s23 = sld [smem:[#allocation7 + $0xa]]  ;;  %s555_s24 = sld [smem:[#allocation7 + $0xb]] }
  0x3b   :  { %s557_s25 = sld [smem:[#allocation7 + $0xc]]  ;;  %s559_s26 = sld [smem:[#allocation7 + $0xd]]  ;;  %v182_v3 = vstv %s53_s1  ;;  %v184_v4 = vstv %s357_s15 }
  0x3c   :  { %s561_s27 = sld [smem:[#allocation7 + $0xe]]  ;;  %s563_s28 = sld [smem:[#allocation7 + $0xf]]  ;;  %v183_v5 = vmul.f32 %v182_v3, %v178_v0  ;;  %v185_v6 = vmul.f32 %v184_v4, %v179_v1  ;;  %v187_v7 = vstv %s358_s2  ;;  %v190_v9 = vstv %s543_s16 }
  0x3d   :  { %v188_v8 = vmul.f32 %v187_v7, %v180_v2  ;;  %v196_v10 = vstv %s360_s17  ;;  %v198_v11 = vstv %s361_s18  ;;  %s566_s29 = sld [smem:[#allocation7 + $0x10]]  ;;  %s568_s30 = sld [smem:[#allocation7 + $0x11]]  ;;  %v191_v23 = vmul.f32 %v190_v9, %v181_v12 }
  0x3e   :  { %v186_v13 = vadd.f32 %v185_v6, %v183_v5  ;;  %v197_v14 = vmul.f32 %v196_v10, %v178_v0  ;;  %v199_v15 = vmul.f32 %v198_v11, %v179_v1  ;;  %v201_v16 = vstv %s545_s19  ;;  %s571_s4 = sld [smem:[#allocation7 + $0x12]]  ;;  %s573_s5 = sld [smem:[#allocation7 + $0x13]] }
  0x3f   :  { %v204_v17 = vstv %s547_s20  ;;  %v210_v18 = vstv %s549_s21  ;;  %v212_v19 = vstv %s551_s22  ;;  %s578_s6 = sld [smem:[#allocation7 + $0x14]]  ;;  %s580_s0 = sld [smem:[#allocation7 + $0x15]]  ;;  %v202_v21 = vmul.f32 %v201_v16, %v180_v2 }
  0x40   :  { %v200_v20 = vadd.f32 %v199_v15, %v197_v14  ;;  %v211_v22 = vmul.f32 %v210_v18, %v178_v0  ;;  %s582_s7 = sld [smem:[#allocation7 + $0x16]]  ;;  %s584_s8 = sld [smem:[#allocation7 + $0x17]]  ;;  %v213_v24 = vmul.f32 %v212_v19, %v179_v1  ;;  %v215_v25 = vstv %s553_s23 }
  0x41   :  { %v224_v26 = vstv %s557_s25  ;;  %s588_s9 = sld [smem:[#allocation7 + $0x18]]  ;;  %s590_s10 = sld [smem:[#allocation7 + $0x19]]  ;;  %v189_v27 = vadd.f32 %v188_v8, %v186_v13  ;;  %v205_v28 = vmul.f32 %v204_v17, %v181_v12  ;;  %v216_v29 = vmul.f32 %v215_v25, %v180_v2 }
  0x42   :  { %v218_v30 = vstv %s555_s24  ;;  %s593_s11 = sld [smem:[#allocation7 + $0x1a]]  ;;  %s595_s12 = sld [smem:[#allocation7 + $0x1b]]  ;;  %v214_v31 = vadd.f32 %v213_v24, %v211_v22  ;;  %v225_v32 = vmul.f32 %v224_v26, %v178_v0  ;;  %v226_v33 = vstv %s559_s26 }
  0x43   :  { %v229_v34 = vstv %s561_s27  ;;  %s599_s13 = sld [smem:[#allocation7 + $0x1c]]  ;;  %s601_s14 = sld [smem:[#allocation7 + $0x1d]]  ;;  %v203_v35 = vadd.f32 %v202_v21, %v200_v20  ;;  %v227_v36 = vmul.f32 %v226_v33, %v179_v1  ;;  %v232_v38 = vstv %s563_s28  ;;  %v405_v33 = vld [vmem:[#allocation5 + $0x4] ss:$0 sm:$0xff] }
  0x44   :  { %v230_v37 = vmul.f32 %v229_v34, %v180_v2  ;;  %s388_s1 = sld [smem:[#allocation7 + $0x20]]  ;;  %s389_s15 = sld [smem:[#allocation7 + $0x21]]  ;;  %v217_v39 = vadd.f32 %v216_v29, %v214_v31  ;;  %v219_v40 = vmul.f32 %v218_v30, %v181_v12  ;;  %v233_v42 = vmul.f32 %v232_v38, %v181_v12 }
  0x45   :  { %s390_s2 = sld [smem:[#allocation7 + $0x22]]  ;;  %s391_s16 = sld [smem:[#allocation7 + $0x23]]  ;;  %v228_v41 = vadd.f32 %v227_v36, %v225_v32  ;;  %v192_v43 = vadd.f32 %v191_v23, %v189_v27  ;;  %v206_v44 = vadd.f32 %v205_v28, %v203_v35  ;;  %v238_v46 = vstv %s566_s29  ;;  %v401_v32 = vld [vmem:[#allocation5] ss:$0 sm:$0xff]  ;;  %v403_v36 = vld [vmem:[#allocation5 + $0x2] ss:$0 sm:$0xff] }
  0x46   :  { %s604_s17 = sld [smem:[#allocation7 + $0x1e]]  ;;  %s606_s18 = sld [smem:[#allocation7 + $0x1f]]  ;;  %v240_v47 = vstv %s568_s30  ;;  %v220_v48 = vadd.f32 %v219_v40, %v217_v39  ;;  %v243_v49 = vstv %s571_s4  ;;  %v246_v50 = vstv %s573_s5  ;;  %v407_v40 = vld [vmem:[#allocation5 + $0x6] ss:$0 sm:$0xff] }
  0x47   :  { %v231_v45 = vadd.f32 %v230_v37, %v228_v41  ;;  %v249_v51 = vstv %s578_s6  ;;  %v251_v53 = vstv %s580_s0  ;;  %v254_v54 = vstv %s582_s7  ;;  %v402_v41 = vld [vmem:[#allocation5 + $0x1] ss:$0 sm:$0xff]  ;;  %s392_s19 = sld [smem:[#allocation7 + $0x24]]  ;;  %s394_s20 = sld [smem:[#allocation7 + $0x26]] }
  0x48   :  { %v257_v55 = vstv %s584_s8  ;;  %v260_v58 = vstv %s588_s9  ;;  %v262_v59 = vstv %s590_s10  ;;  %v265_v2 = vstv %s593_s11  ;;  %s393_s21 = sld [smem:[#allocation7 + $0x25]]  ;;  %s395_s22 = sld [smem:[#allocation7 + $0x27]] }
  0x49   :  { %v234_v52 = vadd.f32 %v233_v42, %v231_v45  ;;  %v268_v3 = vstv %s595_s12  ;;  %v271_v6 = vstv %s599_s13  ;;  %v273_v7 = vstv %s601_s14  ;;  %v406_v42 = vld [vmem:[#allocation5 + $0x5] ss:$0 sm:$0xff]  ;;  %v411_v45 = vld [vmem:[#allocation5 + $0xa] ss:$0 sm:$0xff]  ;;  %s396_s23 = sld [smem:[#allocation7 + $0x28]]  ;;  %s397_s24 = sld [smem:[#allocation7 + $0x29]] }
  0x4a   :  { %v193_v56 = vstv %s388_s1  ;;  %v207_v57 = vstv %s389_s15  ;;  %s398_s25 = sld [smem:[#allocation7 + $0x2a]]  ;;  %s399_s26 = sld [smem:[#allocation7 + $0x2b]] }
  0x4b   :  { %v194_v60 = vadd.f32 %v193_v56, %v192_v43  ;;  %v208_v61 = vadd.f32 %v207_v57, %v206_v44  ;;  %v221_v62 = vstv %s390_s2  ;;  %v235_v63 = vstv %s391_s16  ;;  %v409_v43 = vld [vmem:[#allocation5 + $0x8] ss:$0 sm:$0xff]  ;;  %s400_s27 = sld [smem:[#allocation7 + $0x2c]] }
  0x4c   :  { %v222_v0 = vadd.f32 %v221_v62, %v220_v48  ;;  %v236_v1 = vadd.f32 %v235_v63, %v234_v52  ;;  %v276_v10 = vstv %s604_s17  ;;  %v279_v11 = vstv %s606_s18 }
  0x4d   :  { %v195_v4 = vmax.f32 %v194_v60, 0.0  ;;  %v209_v5 = vmax.f32 %v208_v61, 0.0 }
  0x4e   :  { %v223_v8 = vmax.f32 %v222_v0, 0.0  ;;  %v237_v9 = vmax.f32 %v236_v1, 0.0  ;;  %v412_v0 = vld [vmem:[#allocation5 + $0xb] ss:$0 sm:$0xff] }
  0x4f   :  { %v239_v12 = vmul.f32 %v238_v46, %v195_v4  ;;  %v241_v13 = vmul.f32 %v240_v47, %v209_v5  ;;  %v250_v14 = vmul.f32 %v249_v51, %v195_v4  ;;  %v252_v15 = vmul.f32 %v251_v53, %v209_v5  ;;  %v410_v46 = vld [vmem:[#allocation5 + $0x9] ss:$0 sm:$0xff]  ;;  %v413_v47 = vld [vmem:[#allocation5 + $0xc] ss:$0 sm:$0xff]  ;;  %v415_v51 = vld [vmem:[#allocation5 + $0xe] ss:$0 sm:$0xff] }
  0x50   :  { %v244_v16 = vmul.f32 %v243_v49, %v223_v8  ;;  %v247_v17 = vmul.f32 %v246_v50, %v237_v9  ;;  %v255_v18 = vmul.f32 %v254_v54, %v223_v8  ;;  %v258_v19 = vmul.f32 %v257_v55, %v237_v9  ;;  %v414_v55 = vld [vmem:[#allocation5 + $0xd] ss:$0 sm:$0xff] }
  0x51   :  { %v242_v20 = vadd.f32 %v241_v13, %v239_v12  ;;  %v253_v21 = vadd.f32 %v252_v15, %v250_v14  ;;  %v261_v22 = vmul.f32 %v260_v58, %v195_v4  ;;  %v263_v23 = vmul.f32 %v262_v59, %v209_v5  ;;  %v404_v58 = vld [vmem:[#allocation5 + $0x3] ss:$0 sm:$0xff]  ;;  %v408_v59 = vld [vmem:[#allocation5 + $0x7] ss:$0 sm:$0xff] }
  0x52   :  { %v266_v24 = vmul.f32 %v265_v2, %v223_v8  ;;  %v269_v25 = vmul.f32 %v268_v3, %v237_v9  ;;  %v272_v26 = vmul.f32 %v271_v6, %v195_v4  ;;  %v274_v27 = vmul.f32 %v273_v7, %v209_v5  ;;  %v416_v5 = vld [vmem:[#allocation5 + $0xf] ss:$0 sm:$0xff] }
  0x53   :  { %v245_v28 = vadd.f32 %v244_v16, %v242_v20  ;;  %v256_v29 = vadd.f32 %v255_v18, %v253_v21  ;;  %v264_v30 = vadd.f32 %v263_v23, %v261_v22  ;;  %v277_v31 = vmul.f32 %v276_v10, %v223_v8 }
  0x54   :  { %v275_v34 = vadd.f32 %v274_v27, %v272_v26  ;;  %v280_v35 = vmul.f32 %v279_v11, %v237_v9  ;;  %v324_v26 = vstv %s394_s20 }
  0x55   :  { %v248_v37 = vadd.f32 %v247_v17, %v245_v28  ;;  %v259_v38 = vadd.f32 %v258_v19, %v256_v29  ;;  %v267_v39 = vadd.f32 %v266_v24, %v264_v30  ;;  %v293_v24 = vstv %s392_s19 }
  0x56   :  { %v278_v44 = vadd.f32 %v277_v31, %v275_v34  ;;  %v308_v29 = vstv %s393_s21  ;;  %v340_v31 = vstv %s395_s22 }
  0x57   :  { %v270_v48 = vadd.f32 %v269_v25, %v267_v39  ;;  %v282_v49 = vmul.f32 %v401_v32, %v248_v37  ;;  %v283_v50 = vmul.f32 %v405_v33, %v259_v38  ;;  %v314_v52 = vmul.f32 %v403_v36, %v248_v37 }
  0x58   :  { %v281_v53 = vadd.f32 %v280_v35, %v278_v44  ;;  %v315_v54 = vmul.f32 %v407_v40, %v259_v38  ;;  %v298_v56 = vmul.f32 %v402_v41, %v248_v37  ;;  %v299_v57 = vmul.f32 %v406_v42, %v259_v38 }
  0x59   :  { %v284_v60 = vadd.f32 %v283_v50, %v282_v49  ;;  %v285_v61 = vmul.f32 %v409_v43, %v270_v48  ;;  %v317_v62 = vmul.f32 %v411_v45, %v270_v48  ;;  %v301_v63 = vmul.f32 %v410_v46, %v270_v48 }
  0x5a   :  { %v287_v1 = vmul.f32 %v413_v47, %v281_v53  ;;  %v316_v2 = vadd.f32 %v315_v54, %v314_v52  ;;  %v319_v3 = vmul.f32 %v415_v51, %v281_v53  ;;  %v300_v4 = vadd.f32 %v299_v57, %v298_v56 }
  0x5b   :  { %v286_v6 = vadd.f32 %v285_v61, %v284_v60  ;;  %v303_v7 = vmul.f32 %v414_v55, %v281_v53  ;;  %v330_v8 = vmul.f32 %v404_v58, %v248_v37  ;;  %v331_v9 = vmul.f32 %v408_v59, %v259_v38 }
  0x5c   :  { %v318_v10 = vadd.f32 %v317_v62, %v316_v2  ;;  %v302_v11 = vadd.f32 %v301_v63, %v300_v4  ;;  %v333_v12 = vmul.f32 %v412_v0, %v270_v48  ;;  %v335_v15 = vmul.f32 %v416_v5, %v281_v53 }
  0x5d   :  { %v288_v13 = vadd.f32 %v287_v1, %v286_v6  ;;  %v332_v14 = vadd.f32 %v331_v9, %v330_v8  ;;  %v296_v36 = vstv %s396_s23  ;;  %v311_v37 = vstv %s397_s24 }
  0x5e   :  { %v320_v16 = vadd.f32 %v319_v3, %v318_v10  ;;  %v304_v17 = vadd.f32 %v303_v7, %v302_v11  ;;  %v327_v41 = vstv %s398_s25  ;;  %v343_v42 = vstv %s399_s26 }
  0x5f   :  { %v290_v18 = vsel %vm289_vm0, %v288_v13, 0.0  ;;  %v334_v19 = vadd.f32 %v333_v12, %v332_v14  ;;  %v346_v50 = vstv %s400_s27 }
  0x60   :  { %291 = vadd.xlane.f32.xlu0 %v290_v18  ;;  %v321_v20 = vsel %vm289_vm0, %v320_v16, 0.0  ;;  %v305_v21 = vsel %vm289_vm0, %v304_v17, 0.0 }
  0x61   :  { %322 = vadd.xlane.f32.xlu1 %v321_v20  ;;  %v336_v22 = vadd.f32 %v335_v15, %v334_v19 }
  0x63   :  { %v337_v23 = vsel %vm289_vm0, %v336_v22, 0.0 }
  0x64   :  { %306 = vadd.xlane.f32.xlu0 %v305_v21 }
  0x65   :  { %338 = vadd.xlane.f32.xlu1 %v337_v23 }
  0xed   :  { %v292_v25 = vpop.xlane.xlu0 %291 }
  0xee   :  { %v294_v27 = vadd.f32 %v293_v24, %v292_v25  ;;  %v323_v28 = vpop.xlane.xlu1 %322 }
  0xef   :  { %v325_v30 = vadd.f32 %v324_v26, %v323_v28 }
  0xf0   :  { %v295_v33 = vmax.f32 %v294_v27, 0.0 }
  0xf1   :  { %v307_v32 = vpop.xlane.xlu0 %306  ;;  %v326_v39 = vmax.f32 %v325_v30, 0.0 }
  0xf2   :  { %v309_v34 = vadd.f32 %v308_v29, %v307_v32  ;;  %v339_v35 = vpop.xlane.xlu1 %338  ;;  %v297_v44 = vmul.f32 %v296_v36, %v295_v33 }
  0xf3   :  { %v341_v38 = vadd.f32 %v340_v31, %v339_v35  ;;  %v328_v46 = vmul.f32 %v327_v41, %v326_v39 }
  0xf4   :  { %v310_v40 = vmax.f32 %v309_v34, 0.0 }
  0xf5   :  { %v342_v43 = vmax.f32 %v341_v38, 0.0 }
  0xf6   :  { %v312_v45 = vmul.f32 %v311_v37, %v310_v40 }
  0xf7   :  { %v344_v48 = vmul.f32 %v343_v42, %v342_v43 }
  0xf8   :  { %v313_v47 = vadd.f32 %v312_v45, %v297_v44 }
  0xfa   :  { %v329_v49 = vadd.f32 %v328_v46, %v313_v47 }
  0xfc   :  { %v345_v51 = vadd.f32 %v344_v48, %v329_v49 }
  0xfe   :  { %v347_v52 = vadd.f32 %v346_v50, %v345_v51 }
 0x100   :  { %349 = vst.msk [vmem:[%s634_s3] sm:$0x3] %vm348_vm1, %v347_v52 }
 0x101   :  { %354 = vsyncpa [#allocation3], 1 }
 0x102   :  { %355 = vsyncpa [#allocation6], 1 }
 0x103   :  { %356 = vsyncpa [#allocation4], 1 }

</bundles_post_ra>
